<compile_context>
chip_gen: v5e
topology: v5e:2x2
jax: 0.10.0
libtpu: 0.0.40
codegen_flags: <defaults>
</compile_context>

<pallas_src>
import jax
import jax.numpy as jnp
from jax.experimental import pallas as pl
from jax.experimental.pallas import tpu as pltpu

KH = KW = 3
STRIDE = 2
PAD = 1


def conv_out_kernel(x_ref, band_ref, o_ref):
    """NB batch elements: strided 3x3 conv as one im2col matmul.

    x_ref:    (NB, Cin, H, W)        VMEM  input block (NCHW)
    band_ref: (Cin*KH*W + 1, Cout*Wo) VMEM weights folded with the W tap/stride
                                      selection + bias row
    o_ref:    (NB, Ho, Cout*Wo)      VMEM  lane-dense output block
    """
    NB, Cin, H, W = x_ref.shape
    _, Ho, CoutWo = o_ref.shape
    M = NB * Ho

    x = x_ref[...].astype(jnp.float32)            # (NB, Cin, H, W)
    zero_row = jnp.zeros((NB, 1, W), jnp.float32)

    # ---- im2col as a value (no scratch, no strided ref reads) --------------
    # Output row i needs input rows 2i-1 (kh=0), 2i (kh=1), 2i+1 (kh=2), with
    # zero rows for the 1-pixel top/bottom padding.  Split rows into
    # (even, odd) pairs via a reshape instead of strided slicing.
    cols = []
    for ci in range(Cin):                          # Cin is small and static
        xc = x[:, ci]                              # (NB, H, W)
        if H % 2 == 1:                             # append bottom pad row so rows pair up
            xc = jnp.concatenate([xc, zero_row], axis=1)
        pairs = xc.reshape(NB, Ho, 2, W)
        even = pairs[:, :, 0, :]                   # rows 2i      -> kh = 1
        odd = pairs[:, :, 1, :]                    # rows 2i + 1  -> kh = 2
        tap0 = jnp.concatenate([zero_row, odd[:, :Ho - 1, :]], axis=1)  # rows 2i - 1 -> kh = 0
        cols.extend([tap0, even, odd])             # K ordering: (ci, kh, w)

    ones = jnp.ones((NB, Ho, 1), jnp.float32)      # bias column
    col = jnp.concatenate(cols + [ones], axis=-1)  # (NB, Ho, K+1)
    col = col.reshape(M, Cin * KH * W + 1)

    # ---- one MXU matmul folds Cin, kh, kw, the stride-2 W selection, Cout,
    #      and the bias ----------------------------------------------------
    out2d = jnp.dot(col, band_ref[...],
                    preferred_element_type=jnp.float32)       # (M, Cout*Wo)

    # ---- single lane-dense slab store --------------------------------------
    o_ref[...] = out2d.reshape(NB, Ho, CoutWo).astype(o_ref.dtype)


def _build_band_matrix(weight_oihw, bias, W, Wo):
    """band[(ci*KH+kh)*W + w, co*Wo + j] = sum_kw w[co,ci,kh,kw]*[w+PAD == STRIDE*j+kw];
    last row is the bias (paired with a ones column in col)."""
    Cout, Cin, _, _ = weight_oihw.shape
    w_idx = jnp.arange(W)[None, :, None]                   # (1, W, 1)
    j_idx = jnp.arange(Wo)[None, None, :]                  # (1, 1, Wo)
    kw_idx = jnp.arange(KW)[:, None, None]                 # (KW, 1, 1)
    sel = (w_idx + PAD == STRIDE * j_idx + kw_idx).astype(jnp.float32)   # (KW, W, Wo)
    band = jnp.einsum('oikl,lwj->ikwoj', weight_oihw.astype(jnp.float32), sel)
    band = band.reshape(Cin * KH * W, Cout * Wo)
    bias_row = jnp.broadcast_to(bias.astype(jnp.float32)[:, None],
                                (Cout, Wo)).reshape(1, Cout * Wo)
    return jnp.concatenate([band, bias_row], axis=0)       # (K+1, Cout*Wo)


def outblock_forward(x_nchw, weight_oihw, bias, *, batch_block=None):
    """Forward of `outblock`: Conv2d(in_ch, out_ch, 3, padding=1, stride=2), NCHW in/out."""
    N, Cin, H, W = x_nchw.shape
    Cout = weight_oihw.shape[0]
    Ho = (H + 2 * PAD - KH) // STRIDE + 1
    Wo = (W + 2 * PAD - KW) // STRIDE + 1
    K = Cin * KH * W

    # Batch block size: default to the whole batch (maximize matmul rows,
    # minimize launch overhead); prefer an even grid >= 2 (v7x has 2 TCs)
    # when the batch is large enough to keep M = NB*Ho >= 16.
    if batch_block is None:
        nb = N
        for cand in range(N // 2, 0, -1):
            if N % cand == 0 and (N // cand) % 2 == 0 and cand * Ho >= 16:
                nb = cand
                break
    else:
        nb = batch_block
    assert N % nb == 0, (N, nb)
    grid = (N // nb,)

    # One-time, tiny weight preprocessing (outside the kernel's hot loop).
    band = _build_band_matrix(weight_oihw, bias, W, Wo)    # (K+1, Cout*Wo) f32

    out_flat = pl.pallas_call(
        conv_out_kernel,
        out_shape=jax.ShapeDtypeStruct((N, Ho, Cout * Wo), x_nchw.dtype),
        grid=grid,
        in_specs=[
            pl.BlockSpec((nb, Cin, H, W), lambda n: (n, 0, 0, 0)),
            pl.BlockSpec((K + 1, Cout * Wo), lambda n: (0, 0)),
        ],
        out_specs=pl.BlockSpec((nb, Ho, Cout * Wo), lambda n: (n, 0, 0)),
        compiler_params=pltpu.CompilerParams(
            dimension_semantics=("parallel",),   # shard the batch grid across v7x's 2 TCs
        ),
    )(x_nchw, band)

    # Wrapper-side layout plumbing: (N, Ho, Cout*Wo) -> (N, Cout, Ho, Wo).
    return out_flat.reshape(N, Ho, Cout, Wo).transpose(0, 2, 1, 3)


if __name__ == "__main__":
    key = jax.random.PRNGKey(0)
    k_x, k_w, k_b = jax.random.split(key, 3)

    # outblock(in_ch=4, out_ch=2) on a (2, 4, 16, 16) NCHW input.
    N, Cin, H, W = 2, 4, 16, 16
    Cout = 2

    x = jax.random.normal(k_x, (N, Cin, H, W), dtype=jnp.float32)

    # PyTorch-style uniform(-1/sqrt(fan_in), 1/sqrt(fan_in)) init.
    fan_in = Cin * KH * KW
    bound = 1.0 / jnp.sqrt(jnp.float32(fan_in))
    weight = jax.random.uniform(k_w, (Cout, Cin, KH, KW), jnp.float32, -bound, bound)
    bias = jax.random.uniform(k_b, (Cout,), jnp.float32, -bound, bound)

    out = jax.block_until_ready(outblock_forward(x, weight, bias))

    # Reference check against XLA's conv (same semantics as nn.Conv2d).
    ref = jax.lax.conv_general_dilated(
        x, weight, window_strides=(STRIDE, STRIDE),
        padding=((PAD, PAD), (PAD, PAD)),
        dimension_numbers=("NCHW", "OIHW", "NCHW"),
    ) + bias[None, :, None, None]

    assert out.shape == ref.shape, (out.shape, ref.shape)
    max_err = float(jnp.max(jnp.abs(out - ref)))
    assert jnp.allclose(out, ref, atol=1e-4, rtol=1e-4), max_err

    print("KERNEL_OK")
</pallas_src>

<mosaic_0001>
module attributes {stable_mosaic.version = 11 : i64} {
  func.func @conv_out_kernel(%arg0: i32, %arg1: memref<2x4x16x16xf32, #tpu.memory_space<vmem>>, %arg2: memref<193x16xf32, #tpu.memory_space<vmem>>, %arg3: memref<2x8x16xf32, #tpu.memory_space<vmem>>) attributes {dimension_semantics = [#tpu.dimension_semantics<parallel>], iteration_bounds = array<i64: 1>, scalar_prefetch = 0 : i64, scratch_operands = 0 : i64, tpu.core_type = #tpu.core_type<tc>, window_params = [{transform_indices = @transform_0, window_bounds = array<i64: 2, 4, 16, 16>}, {pipeline_mode = #tpu.pipeline_mode<synchronous>, transform_indices = @transform_1, window_bounds = array<i64: 193, 16>}, {transform_indices = @transform_2, window_bounds = array<i64: 2, 8, 16>}]} {
    %c0 = arith.constant 0 : index
    %c0_0 = arith.constant 0 : index
    %c0_1 = arith.constant 0 : index
    %c0_2 = arith.constant 0 : index
    %0 = vector.load %arg1[%c0, %c0_0, %c0_1, %c0_2] : memref<2x4x16x16xf32, #tpu.memory_space<vmem>>, vector<2x4x16x16xf32>
    %cst = arith.constant 0.000000e+00 : f32
    %1 = vector.broadcast %cst : f32 to vector<2x1x16xf32>
    %2 = vector.extract_strided_slice %0 {offsets = [0, 0, 0, 0], sizes = [2, 1, 16, 16], strides = [1, 1, 1, 1]} : vector<2x4x16x16xf32> to vector<2x1x16x16xf32>
    %3 = vector.shape_cast %2 : vector<2x1x16x16xf32> to vector<2x16x16xf32>
    %4 = vector.shape_cast %3 : vector<2x16x16xf32> to vector<2x8x2x16xf32>
    %5 = vector.extract_strided_slice %4 {offsets = [0, 0, 0, 0], sizes = [2, 8, 1, 16], strides = [1, 1, 1, 1]} : vector<2x8x2x16xf32> to vector<2x8x1x16xf32>
    %6 = vector.shape_cast %5 : vector<2x8x1x16xf32> to vector<2x8x16xf32>
    %7 = vector.extract_strided_slice %4 {offsets = [0, 0, 1, 0], sizes = [2, 8, 1, 16], strides = [1, 1, 1, 1]} : vector<2x8x2x16xf32> to vector<2x8x1x16xf32>
    %8 = vector.shape_cast %7 : vector<2x8x1x16xf32> to vector<2x8x16xf32>
    %9 = vector.extract_strided_slice %8 {offsets = [0, 0, 0], sizes = [2, 7, 16], strides = [1, 1, 1]} : vector<2x8x16xf32> to vector<2x7x16xf32>
    %10 = tpu.concatenate %1, %9 in 1 : vector<2x1x16xf32>, vector<2x7x16xf32> -> vector<2x8x16xf32>
    %11 = vector.extract_strided_slice %0 {offsets = [0, 1, 0, 0], sizes = [2, 1, 16, 16], strides = [1, 1, 1, 1]} : vector<2x4x16x16xf32> to vector<2x1x16x16xf32>
    %12 = vector.shape_cast %11 : vector<2x1x16x16xf32> to vector<2x16x16xf32>
    %13 = vector.shape_cast %12 : vector<2x16x16xf32> to vector<2x8x2x16xf32>
    %14 = vector.extract_strided_slice %13 {offsets = [0, 0, 0, 0], sizes = [2, 8, 1, 16], strides = [1, 1, 1, 1]} : vector<2x8x2x16xf32> to vector<2x8x1x16xf32>
    %15 = vector.shape_cast %14 : vector<2x8x1x16xf32> to vector<2x8x16xf32>
    %16 = vector.extract_strided_slice %13 {offsets = [0, 0, 1, 0], sizes = [2, 8, 1, 16], strides = [1, 1, 1, 1]} : vector<2x8x2x16xf32> to vector<2x8x1x16xf32>
    %17 = vector.shape_cast %16 : vector<2x8x1x16xf32> to vector<2x8x16xf32>
    %18 = vector.extract_strided_slice %17 {offsets = [0, 0, 0], sizes = [2, 7, 16], strides = [1, 1, 1]} : vector<2x8x16xf32> to vector<2x7x16xf32>
    %19 = tpu.concatenate %1, %18 in 1 : vector<2x1x16xf32>, vector<2x7x16xf32> -> vector<2x8x16xf32>
    %20 = vector.extract_strided_slice %0 {offsets = [0, 2, 0, 0], sizes = [2, 1, 16, 16], strides = [1, 1, 1, 1]} : vector<2x4x16x16xf32> to vector<2x1x16x16xf32>
    %21 = vector.shape_cast %20 : vector<2x1x16x16xf32> to vector<2x16x16xf32>
    %22 = vector.shape_cast %21 : vector<2x16x16xf32> to vector<2x8x2x16xf32>
    %23 = vector.extract_strided_slice %22 {offsets = [0, 0, 0, 0], sizes = [2, 8, 1, 16], strides = [1, 1, 1, 1]} : vector<2x8x2x16xf32> to vector<2x8x1x16xf32>
    %24 = vector.shape_cast %23 : vector<2x8x1x16xf32> to vector<2x8x16xf32>
    %25 = vector.extract_strided_slice %22 {offsets = [0, 0, 1, 0], sizes = [2, 8, 1, 16], strides = [1, 1, 1, 1]} : vector<2x8x2x16xf32> to vector<2x8x1x16xf32>
    %26 = vector.shape_cast %25 : vector<2x8x1x16xf32> to vector<2x8x16xf32>
    %27 = vector.extract_strided_slice %26 {offsets = [0, 0, 0], sizes = [2, 7, 16], strides = [1, 1, 1]} : vector<2x8x16xf32> to vector<2x7x16xf32>
    %28 = tpu.concatenate %1, %27 in 1 : vector<2x1x16xf32>, vector<2x7x16xf32> -> vector<2x8x16xf32>
    %29 = vector.extract_strided_slice %0 {offsets = [0, 3, 0, 0], sizes = [2, 1, 16, 16], strides = [1, 1, 1, 1]} : vector<2x4x16x16xf32> to vector<2x1x16x16xf32>
    %30 = vector.shape_cast %29 : vector<2x1x16x16xf32> to vector<2x16x16xf32>
    %31 = vector.shape_cast %30 : vector<2x16x16xf32> to vector<2x8x2x16xf32>
    %32 = vector.extract_strided_slice %31 {offsets = [0, 0, 0, 0], sizes = [2, 8, 1, 16], strides = [1, 1, 1, 1]} : vector<2x8x2x16xf32> to vector<2x8x1x16xf32>
    %33 = vector.shape_cast %32 : vector<2x8x1x16xf32> to vector<2x8x16xf32>
    %34 = vector.extract_strided_slice %31 {offsets = [0, 0, 1, 0], sizes = [2, 8, 1, 16], strides = [1, 1, 1, 1]} : vector<2x8x2x16xf32> to vector<2x8x1x16xf32>
    %35 = vector.shape_cast %34 : vector<2x8x1x16xf32> to vector<2x8x16xf32>
    %36 = vector.extract_strided_slice %35 {offsets = [0, 0, 0], sizes = [2, 7, 16], strides = [1, 1, 1]} : vector<2x8x16xf32> to vector<2x7x16xf32>
    %37 = tpu.concatenate %1, %36 in 1 : vector<2x1x16xf32>, vector<2x7x16xf32> -> vector<2x8x16xf32>
    %cst_3 = arith.constant 1.000000e+00 : f32
    %38 = vector.broadcast %cst_3 : f32 to vector<2x8x1xf32>
    %39 = tpu.concatenate %10, %6, %8, %19, %15, %17, %28, %24, %26, %37, %33, %35, %38 in 2 : vector<2x8x16xf32>, vector<2x8x16xf32>, vector<2x8x16xf32>, vector<2x8x16xf32>, vector<2x8x16xf32>, vector<2x8x16xf32>, vector<2x8x16xf32>, vector<2x8x16xf32>, vector<2x8x16xf32>, vector<2x8x16xf32>, vector<2x8x16xf32>, vector<2x8x16xf32>, vector<2x8x1xf32> -> vector<2x8x193xf32>
    %40 = vector.shape_cast %39 : vector<2x8x193xf32> to vector<16x193xf32>
    %c0_4 = arith.constant 0 : index
    %c0_5 = arith.constant 0 : index
    %41 = vector.load %arg2[%c0_4, %c0_5] : memref<193x16xf32, #tpu.memory_space<vmem>>, vector<193x16xf32>
    %cst_6 = arith.constant dense<0.000000e+00> : vector<16x16xf32>
    %42 = tpu.matmul %40, %41, %cst_6 {dimension_numbers = #tpu.dot_dimension_numbers<[1], [0], [0], [1], [0, 0, 1, 1], [], []>} : vector<16x193xf32>, vector<193x16xf32>, vector<16x16xf32> -> vector<16x16xf32>
    %43 = vector.shape_cast %42 : vector<16x16xf32> to vector<2x8x16xf32>
    %c0_7 = arith.constant 0 : index
    %c0_8 = arith.constant 0 : index
    %c0_9 = arith.constant 0 : index
    %44 = vector.load %arg3[%c0_7, %c0_8, %c0_9] : memref<2x8x16xf32, #tpu.memory_space<vmem>>, vector<2x8x16xf32>
    tpu.vector_store %arg3[%c0_7, %c0_8, %c0_9], %43 {strides = array<i32>} : memref<2x8x16xf32, #tpu.memory_space<vmem>>, vector<2x8x16xf32>,
    return
  }
  func.func @transform_0(%arg0: i32) -> (i32, i32, i32, i32) {
    %c0_i32 = arith.constant 0 : i32
    %c0_i32_0 = arith.constant 0 : i32
    %c0_i32_1 = arith.constant 0 : i32
    %c0_i32_2 = arith.constant 0 : i32
    return %arg0, %c0_i32, %c0_i32_0, %c0_i32_1 : i32, i32, i32, i32
  }
  func.func @transform_1(%arg0: i32) -> (i32, i32) {
    %c0_i32 = arith.constant 0 : i32
    %c0_i32_0 = arith.constant 0 : i32
    %c0_i32_1 = arith.constant 0 : i32
    return %c0_i32, %c0_i32_0 : i32, i32
  }
  func.func @transform_2(%arg0: i32) -> (i32, i32, i32) {
    %c0_i32 = arith.constant 0 : i32
    %c0_i32_0 = arith.constant 0 : i32
    %c0_i32_1 = arith.constant 0 : i32
    return %arg0, %c0_i32, %c0_i32_0 : i32, i32, i32
  }
}

</mosaic_0001>

<bundles_post_ra>
// kernel: tpu_custom_call.1
= control target key start
LH: loop header
LB: loop body
LE: loop exit
PB: predicated region body
PF: predicated region fallthrough
CT: control target
= control target key end

     0   :  { %vm58_vm0 = vcmask 1042434   ;;  %vm60_vm1 = vcmask 1043459   ;;  %vm62_vm2 = vcmask 1044484   ;;  %vm64_vm3 = vcmask 1045509   ;;  %s1515_s0 = inlined_call_operand.vmem [shape: f32[2,4,16,16], index: 0, kind: input, shape index: {}]   ;;  %s1516_s1 = inlined_call_operand.vmem [shape: f32[193,16], index: 1, kind: input, shape index: {}]   ;;  %s1517_s2 = inlined_call_operand.hbm [shape: f32[2,8,16], index: 2, kind: output, shape index: {}]  }
   0x1   :  { %v715_v0 = vld [vmem:[%s1515_s0 + $0x30] sm:$0xff]  ;;  %v720_v1 = vld [vmem:[%s1515_s0 + $0x38] sm:$0xff]  ;;  %vm66_vm4 = vcmask 1046534   ;;  %vm68_vm5 = vcmask 1047559   ;;  %vm78_vm6 = vcmask 1040384   ;;  %v726_v3 = vld [vmem:[%s1515_s0] sm:$0xff] }
   0x2   :  { %v177_v2 = vrot.slane %v715_v0, 2  ;;  %v178_v4 = vrot.slane %v715_v0, 4  ;;  %v179_v5 = vrot.slane %v715_v0, 6  ;;  %v180_v6 = vrot.slane %v720_v1, 2  ;;  %v735_v8 = vld [vmem:[%s1515_s0 + $0x8] sm:$0xff]  ;;  %v746_v12 = vld [vmem:[%s1515_s0 + $0x40] sm:$0xff] }
   0x3   :  { %v181_v7 = vrot.slane %v720_v1, 4  ;;  %v189_v9 = vperm.slane %v715_v0, 1  ;;  %v193_v11 = vperm.slane %v720_v1, 1  ;;  %v32_v13 = vrot.slane %v726_v3, 2  ;;  %v768_v18 = vld [vmem:[%s1515_s0 + $0x48] sm:$0xff] }
   0x4   :  { %v740_v10 = vperm.slane %v177_v2, 1  ;;  %v751_v14 = vperm.slane %v178_v4, 1  ;;  %v755_v15 = vperm.slane %v179_v5, 1  ;;  %v759_v16 = vperm.slane %v180_v6, 1 }
   0x5   :  { %v763_v17 = vperm.slane %v181_v7, 1  ;;  %v33_v20 = vrot.slane %v726_v3, 4  ;;  %v34_v21 = vrot.slane %v726_v3, 6  ;;  %v35_v22 = vrot.slane %v735_v8, 2 }
   0x6   :  { %v203_v19 = vsel %vm58_vm0, %v740_v10, %v189_v9  ;;  %v36_v24 = vrot.slane %v735_v8, 4  ;;  %v37_v25 = vrot.slane %v735_v8, 6  ;;  %v38_v26 = vrot.slane %v746_v12, 2 }
   0x7   :  { %v204_v23 = vsel %vm60_vm1, %v751_v14, %v203_v19  ;;  %v39_v28 = vrot.slane %v746_v12, 4  ;;  %v40_v29 = vrot.slane %v746_v12, 6  ;;  %v41_v30 = vrot.slane %v768_v18, 2 }
   0x8   :  { %v205_v27 = vsel %vm62_vm2, %v755_v15, %v204_v23  ;;  %v42_v32 = vrot.slane %v768_v18, 4  ;;  %v43_v33 = vrot.slane %v768_v18, 6  ;;  %v219_v34 = vperm.slane %v726_v3, 0 }
   0x9   :  { %v206_v31 = vsel %vm64_vm3, %v193_v11, %v205_v27 }
   0xa   :  { %7 = vsyncpa [#allocation3], 0  ;;  %v207_v35 = vsel %vm66_vm4, %v759_v16, %v206_v31  ;;  %v220_v36 = vperm.slane %v32_v13, 0  ;;  %v221_v37 = vperm.slane %v33_v20, 0  ;;  %v222_v38 = vperm.slane %v34_v21, 0  ;;  %v811_v43 = vld [vmem:[%s1515_s0 + $0x10] sm:$0xff] }
   0xb   :  { %v208_v39 = vsel %vm68_vm5, %v763_v17, %v207_v35  ;;  %v223_v40 = vperm.slane %v735_v8, 0  ;;  %v224_v41 = vperm.slane %v35_v22, 0  ;;  %v225_v42 = vperm.slane %v36_v24, 0  ;;  %s687_s23 = smov 16   ;;  %v830_v52 = vld [vmem:[%s1515_s0 + $0x18] sm:$0xff]  ;;  %v839_v55 = vld [vmem:[%s1515_s0 + $0x50] sm:$0xff] }
   0xc   :  { %v217_v44 = vsel %vm78_vm6, 0.0, %v208_v39  ;;  %v226_v45 = vperm.slane %v37_v25, 0  ;;  %v227_v46 = vperm.slane %v746_v12, 0  ;;  %v228_v47 = vperm.slane %v38_v26, 0  ;;  %v847_v59 = vld [vmem:[%s1515_s0 + $0x58] sm:$0xff]  ;;  %s688_s30 = smov 48  }
   0xd   :  { %408 = vrot.lane.b32.xlu1 %v217_v44, %s687_s23  ;;  %v229_v48 = vperm.slane %v39_v28, 0  ;;  %v230_v49 = vperm.slane %v40_v29, 0  ;;  %v231_v50 = vperm.slane %v768_v18, 0  ;;  %v232_v51 = vperm.slane %v41_v30, 0  ;;  %s689_s7 = smov 32   ;;  %s690_s8 = smov 80  }
   0xe   :  { %v233_v53 = vperm.slane %v42_v32, 0  ;;  %v234_v54 = vperm.slane %v43_v33, 0  ;;  %vm235_vm7 = vcmask 1041409   ;;  %v85_v56 = vrot.slane %v811_v43, 2  ;;  %s692_s21 = smov 64   ;;  %s693_s22 = smov 96  }
   0xf   :  { %v236_v57 = vsel %vm235_vm7, %v220_v36, %v219_v34  ;;  %v243_v58 = vsel %vm235_vm7, %v228_v47, %v227_v46  ;;  %v86_v60 = vrot.slane %v811_v43, 4  ;;  %v87_v61 = vrot.slane %v811_v43, 6  ;;  %s590_s15 = sshll.u32 %s1517_s2, 4  ;;  %s695_s16 = smov 128   ;;  %s591_s15 = int_to_ptr.hbm [resolvable:$true] %s590_s15 }
  0x10   :  { %v237_v62 = vsel %vm58_vm0, %v221_v37, %v236_v57  ;;  %v244_v63 = vsel %vm58_vm0, %v229_v48, %v243_v58  ;;  %v1524_v19 = vrot.slane %v830_v52, 2  ;;  %v1523_v23 = vrot.slane %v830_v52, 4 }
  0x11   :  { %v238_v27 = vsel %vm60_vm1, %v222_v38, %v237_v62  ;;  %v245_v31 = vsel %vm60_vm1, %v230_v49, %v244_v63  ;;  %v1522_v34 = vrot.slane %v839_v55, 2  ;;  %v1521_v35 = vrot.slane %v839_v55, 4 }
  0x12   :  { %v239_v36 = vsel %vm62_vm2, %v223_v40, %v238_v27  ;;  %v246_v39 = vsel %vm62_vm2, %v231_v50, %v245_v31  ;;  %v1520_v37 = vrot.slane %v839_v55, 6  ;;  %v1518_v44 = vrot.slane %v847_v59, 2 }
  0x13   :  { %v240_v46 = vsel %vm64_vm3, %v224_v41, %v239_v36  ;;  %v247_v47 = vsel %vm64_vm3, %v232_v51, %v246_v39  ;;  %v1519_v38 = vrot.slane %v847_v59, 4  ;;  %v97_v48 = vperm.slane %v811_v43, 1 }
  0x14   :  { %v241_v49 = vsel %vm66_vm4, %v225_v42, %v240_v46  ;;  %v248_v57 = vsel %vm66_vm4, %v233_v53, %v247_v47  ;;  %v98_v40 = vperm.slane %v85_v56, 1  ;;  %v99_v50 = vperm.slane %v86_v60, 1 }
  0x15   :  { %v242_v58 = vsel %vm68_vm5, %v226_v45, %v241_v49  ;;  %v249_v41 = vsel %vm68_vm5, %v234_v54, %v248_v57  ;;  %v100_v51 = vperm.slane %v87_v61, 1  ;;  %v101_v62 = vperm.slane %v830_v52, 1 }
  0x16   :  { %v631_v63 = vpack.i.bf16 %v242_v58, %v249_v41  ;;  %v880_v42 = vperm.slane %v1524_v19, 1  ;;  %v884_v53 = vperm.slane %v1523_v23, 1  ;;  %v104_v27 = vperm.slane %v839_v55, 1 }
  0x17   :  { %v105_v45 = vperm.slane %v1522_v34, 1  ;;  %v106_v54 = vperm.slane %v1521_v35, 1  ;;  %v893_v31 = vperm.slane %v1520_v37, 1  ;;  %v108_v36 = vperm.slane %v847_v59, 1 }
  0x18   :  { %632 = vrot.lane.b32.xlu0 %v631_v63, %s687_s23  ;;  %v899_v39 = vperm.slane %v1518_v44, 1  ;;  %v903_v46 = vperm.slane %v1519_v38, 1  ;;  %v111_v47 = vsel %vm58_vm0, %v98_v40, %v97_v48  ;;  %v1525_v49 = vperm.slane %v726_v3, 1 }
  0x19   :  { %v112_v57 = vsel %vm60_vm1, %v99_v50, %v111_v47  ;;  %v117_v58 = vsel %vm58_vm0, %v105_v45, %v104_v27  ;;  %v911_v41 = vperm.slane %v32_v13, 1  ;;  %v915_v63 = vperm.slane %v33_v20, 1 }
  0x1a   :  { %v113_v44 = vsel %vm62_vm2, %v100_v51, %v112_v57  ;;  %v118_v38 = vsel %vm60_vm1, %v106_v54, %v117_v58  ;;  %v921_v37 = vperm.slane %v34_v21, 1  ;;  %v1527_v47 = vperm.slane %v735_v8, 1 }
  0x1b   :  { %v114_v35 = vsel %vm64_vm3, %v101_v62, %v113_v44  ;;  %v119_v13 = vsel %vm62_vm2, %v893_v31, %v118_v38  ;;  %v931_v20 = vperm.slane %v35_v22, 1  ;;  %v935_v57 = vperm.slane %v36_v24, 1 }
  0x1c   :  { %v115_v21 = vsel %vm66_vm4, %v880_v42, %v114_v35  ;;  %v120_v58 = vsel %vm64_vm3, %v108_v36, %v119_v13  ;;  %v1526_v44 = vperm.slane %v746_v12, 1  ;;  %v945_v38 = vperm.slane %v38_v26, 1 }
  0x1d   :  { %v116_v22 = vsel %vm68_vm5, %v884_v53, %v115_v21  ;;  %v121_v24 = vsel %vm66_vm4, %v899_v39, %v120_v58  ;;  %v953_v34 = vperm.slane %v39_v28, 1  ;;  %v957_v35 = vperm.slane %v40_v29, 1 }
  0x1e   :  { %v122_v13 = vsel %vm68_vm5, %v903_v46, %v121_v24  ;;  %v125_v26 = vsel %vm78_vm6, 0.0, %v116_v22  ;;  %v1528_v23 = vperm.slane %v768_v18, 1  ;;  %v965_v21 = vperm.slane %v41_v30, 1 }
  0x1f   :  { %v126_v58 = vsel %vm78_vm6, 0.0, %v122_v13  ;;  %v970_v28 = vperm.slane %v42_v32, 1  ;;  %v256_v29 = vperm.slane %v37_v25, 1  ;;  %v257_v24 = vperm.slane %v43_v33, 1 }
  0x20   :  { %v641_v19 = vpack.i.bf16 %v125_v26, %v126_v58  ;;  %v258_v22 = vsel %vm235_vm7, %v911_v41, %v1525_v49  ;;  %v265_v30 = vsel %vm235_vm7, %v945_v38, %v1526_v44  ;;  %v90_v32 = vrot.slane %v830_v52, 6 }
  0x21   :  { %v259_v13 = vsel %vm58_vm0, %v915_v63, %v258_v22  ;;  %v266_v25 = vsel %vm58_vm0, %v953_v34, %v265_v30  ;;  %v96_v33 = vrot.slane %v847_v59, 6  ;;  %v324_v26 = vsel %vm235_vm7, %v98_v40, %v97_v48 }
  0x22   :  { %642 = vrot.lane.b32.xlu1 %v641_v19, %s688_s30  ;;  %v260_v58 = vsel %vm60_vm1, %v921_v37, %v259_v13  ;;  %v267_v49 = vsel %vm60_vm1, %v957_v35, %v266_v25  ;;  %v322_v44 = vperm.slane %v90_v32, 1  ;;  %v325_v22 = vsel %vm58_vm0, %v99_v50, %v324_v26 }
  0x23   :  { %v261_v30 = vsel %vm62_vm2, %v1527_v47, %v260_v58  ;;  %v268_v48 = vsel %vm62_vm2, %v1528_v23, %v267_v49  ;;  %v323_v19 = vperm.slane %v96_v33, 1  ;;  %v326_v40 = vsel %vm60_vm1, %v100_v51, %v325_v22 }
  0x24   :  { %v262_v13 = vsel %vm64_vm3, %v931_v20, %v261_v30  ;;  %v269_v25 = vsel %vm64_vm3, %v965_v21, %v268_v48  ;;  %v327_v50 = vsel %vm62_vm2, %v101_v62, %v326_v40  ;;  %v331_v26 = vsel %vm235_vm7, %v105_v45, %v104_v27  ;;  %v1026_v30 = vld [vmem:[%s1515_s0 + $0x70] sm:$0xff] }
  0x25   :  { %v263_v49 = vsel %vm66_vm4, %v935_v57, %v262_v13  ;;  %v270_v58 = vsel %vm66_vm4, %v970_v28, %v269_v25  ;;  %v328_v51 = vsel %vm64_vm3, %v880_v42, %v327_v50  ;;  %v332_v22 = vsel %vm58_vm0, %v106_v54, %v331_v26 }
  0x26   :  { %v264_v62 = vsel %vm68_vm5, %v256_v29, %v263_v49  ;;  %v271_v27 = vsel %vm68_vm5, %v257_v24, %v270_v58  ;;  %v329_v45 = vsel %vm66_vm4, %v884_v53, %v328_v51  ;;  %v333_v48 = vsel %vm60_vm1, %v893_v31, %v332_v22  ;;  %v1042_v29 = vld [vmem:[%s1515_s0 + $0x78] sm:$0xff] }
  0x27   :  { %v636_v40 = vpack.i.bf16 %v264_v62, %v271_v27  ;;  %v330_v42 = vsel %vm68_vm5, %v322_v44, %v329_v45  ;;  %v334_v54 = vsel %vm62_vm2, %v108_v36, %v333_v48  ;;  %v182_v13 = vrot.slane %v720_v1, 6 }
  0x28   :  { %v335_v53 = vsel %vm64_vm3, %v899_v39, %v334_v54  ;;  %v452_v31 = vsel %vm235_vm7, %v740_v10, %v189_v9  ;;  %v1536_v44 = vrot.slane %v1026_v30, 2  ;;  %v1535_v24 = vrot.slane %v1026_v30, 4  ;;  %v1105_v54 = vld [vmem:[%s1515_s0 + $0x60] sm:$0xff] }
  0x29   :  { %637 = vrot.lane.b32.xlu0 %v636_v40, %s689_s7  ;;  %v336_v36 = vsel %vm66_vm4, %v903_v46, %v335_v53  ;;  %v450_v25 = vperm.slane %v182_v13, 1  ;;  %v453_v50 = vsel %vm58_vm0, %v751_v14, %v452_v31  ;;  %v1532_v39 = vrot.slane %v1026_v30, 6 }
  0x2a   :  { %v337_v26 = vsel %vm68_vm5, %v323_v19, %v336_v36  ;;  %v454_v9 = vsel %vm60_vm1, %v755_v15, %v453_v50  ;;  %v1531_v10 = vrot.slane %v1042_v29, 2  ;;  %v1529_v49 = vrot.slane %v1042_v29, 4 }
  0x2b   :  { %v651_v58 = vpack.i.bf16 %v330_v42, %v337_v26  ;;  %v455_v46 = vsel %vm62_vm2, %v193_v11, %v454_v9  ;;  %v196_v51 = vperm.slane %v1026_v30, 1  ;;  %v1069_v14 = vperm.slane %v1536_v44, 1 }
  0x2c   :  { %v456_v19 = vsel %vm64_vm3, %v759_v16, %v455_v46  ;;  %v1075_v15 = vperm.slane %v1535_v24, 1  ;;  %v1079_v22 = vperm.slane %v1532_v39, 1  ;;  %v200_v62 = vperm.slane %v1042_v29, 1 }
  0x2d   :  { %652 = vrot.lane.b32.xlu1 %v651_v58, %s690_s8  ;;  %v457_v11 = vsel %vm66_vm4, %v763_v17, %v456_v19  ;;  %v1086_v27 = vperm.slane %v1531_v10, 1  ;;  %v1090_v16 = vperm.slane %v1529_v49, 1  ;;  %v209_v45 = vsel %vm58_vm0, %v1069_v14, %v196_v51 }
  0x2e   :  { %v458_v48 = vsel %vm68_vm5, %v450_v25, %v457_v11  ;;  %v210_v40 = vsel %vm60_vm1, %v1075_v15, %v209_v45  ;;  %v414_v17 = vperm.slane %v715_v0, 0  ;;  %v415_v42 = vperm.slane %v177_v2, 0  ;;  %v1117_v2 = vld [vmem:[%s1515_s0 + $0x68] sm:$0xff] }
  0x2f   :  { %v211_v53 = vsel %vm62_vm2, %v1079_v22, %v210_v40  ;;  %v416_v31 = vperm.slane %v178_v4, 0  ;;  %v417_v36 = vperm.slane %v179_v5, 0  ;;  %v418_v25 = vperm.slane %v720_v1, 0 }
  0x30   :  { %v212_v50 = vsel %vm64_vm3, %v200_v62, %v211_v53  ;;  %v419_v26 = vperm.slane %v180_v6, 0  ;;  %v420_v4 = vperm.slane %v181_v7, 0  ;;  %v421_v9 = vperm.slane %v182_v13, 0 }
  0x31   :  { %466 = vrot.lane.b32.xlu0 %v458_v48, %s688_s30  ;;  %v213_v0 = vsel %vm66_vm4, %v1086_v27, %v212_v50  ;;  %v430_v5 = vsel %vm235_vm7, %v415_v42, %v414_v17  ;;  %v137_v58 = vrot.slane %v1105_v54, 2  ;;  %v138_v46 = vrot.slane %v1105_v54, 4 }
  0x32   :  { %v214_v19 = vsel %vm68_vm5, %v1090_v16, %v213_v0  ;;  %v431_v6 = vsel %vm58_vm0, %v416_v31, %v430_v5  ;;  %v1538_v1 = vrot.slane %v1105_v54, 6  ;;  %v1537_v7 = vrot.slane %v1117_v2, 2  ;;  %v1150_v31 = vld [vmem:[%s1515_s0 + $0x20] sm:$0xff]  ;;  %v1162_v5 = vld [vmem:[%s1515_s0 + $0x28] sm:$0xff]  ;;  %s691_s0 = smov 112  }
  0x33   :  { %v218_v13 = vsel %vm78_vm6, 0.0, %v214_v19  ;;  %v432_v11 = vsel %vm60_vm1, %v417_v36, %v431_v6  ;;  %v1533_v45 = vrot.slane %v1117_v2, 4  ;;  %v1530_v48 = vrot.slane %v1117_v2, 6 }
  0x34   :  { %v433_v40 = vsel %vm62_vm2, %v418_v25, %v432_v11  ;;  %v360_v17 = vperm.slane %v1105_v54, 0  ;;  %v361_v42 = vperm.slane %v137_v58, 0  ;;  %v362_v53 = vperm.slane %v138_v46, 0 }
  0x35   :  { %410 = vrot.lane.b32.xlu1 %v218_v13, %s687_s23  ;;  %v434_v36 = vsel %vm64_vm3, %v419_v26, %v433_v40  ;;  %v363_v25 = vperm.slane %v1538_v1, 0  ;;  %v364_v50 = vperm.slane %v1117_v2, 0  ;;  %v365_v0 = vperm.slane %v1537_v7, 0 }
  0x36   :  { %v435_v19 = vsel %vm66_vm4, %v420_v4, %v434_v36  ;;  %v366_v6 = vperm.slane %v1533_v45, 0  ;;  %v367_v26 = vperm.slane %v1530_v48, 0  ;;  %v375_v13 = vsel %vm235_vm7, %v361_v42, %v360_v17 }
  0x37   :  { %v436_v11 = vsel %vm68_vm5, %v421_v9, %v435_v19  ;;  %v376_v40 = vsel %vm58_vm0, %v362_v53, %v375_v13  ;;  %v131_v47 = vrot.slane %v1150_v31, 2  ;;  %v132_v23 = vrot.slane %v1150_v31, 4 }
  0x38   :  { %444 = vrot.lane.b32.xlu2 %v436_v11, %s689_s7  ;;  %v377_v4 = vsel %vm60_vm1, %v363_v25, %v376_v40  ;;  %v133_v36 = vrot.slane %v1150_v31, 6  ;;  %v134_v49 = vrot.slane %v1162_v5, 2  ;;  %v135_v48 = vrot.slane %v1162_v5, 4 }
  0x39   :  { %v378_v17 = vsel %vm62_vm2, %v364_v50, %v377_v4  ;;  %v1534_v9 = vrot.slane %v1162_v5, 6  ;;  %v352_v42 = vperm.slane %v1150_v31, 0  ;;  %v353_v53 = vperm.slane %v131_v47, 0 }
  0x3a   :  { %v379_v19 = vsel %vm64_vm3, %v365_v0, %v378_v17  ;;  %v354_v25 = vperm.slane %v132_v23, 0  ;;  %v355_v13 = vperm.slane %v133_v36, 0  ;;  %v356_v40 = vperm.slane %v1162_v5, 0 }
  0x3b   :  { %v380_v11 = vsel %vm66_vm4, %v366_v6, %v379_v19  ;;  %v357_v50 = vperm.slane %v134_v49, 0  ;;  %v358_v4 = vperm.slane %v135_v48, 0  ;;  %v359_v0 = vperm.slane %v1534_v9, 0 }
  0x3c   :  { %v381_v10 = vsel %vm68_vm5, %v367_v26, %v380_v11  ;;  %v368_v17 = vsel %vm235_vm7, %v353_v53, %v352_v42  ;;  %v286_v39 = vperm.slane %v811_v43, 0  ;;  %v287_v19 = vperm.slane %v85_v56, 0  ;;  %v516_v42 = vld [vmem:[%s1516_s1 + $0x78] sm:$0xff]  ;;  %v515_v53 = vld [vmem:[%s1516_s1 + $0x70] sm:$0xff] }
  0x3d   :  { %384 = vrot.lane.b32.xlu0 %v381_v10, %s691_s0  ;;  %v369_v6 = vsel %vm58_vm0, %v354_v25, %v368_v17  ;;  %v288_v45 = vperm.slane %v86_v60, 0  ;;  %v289_v26 = vperm.slane %v87_v61, 0  ;;  %v290_v25 = vperm.slane %v830_v52, 0  ;;  %605 = vmatpush.msra.mxu2 %v516_v42 }
  0x3e   :  { %v370_v10 = vsel %vm60_vm1, %v355_v13, %v369_v6  ;;  %v1539_v56 = vrot.slane %v830_v52, 2  ;;  %v1540_v60 = vrot.slane %v830_v52, 4  ;;  %536 = vmatpush.msra.mxu0 %v516_v42  ;;  %v294_v61 = vperm.slane %v839_v55, 0 }
  0x3f   :  { %v371_v43 = vsel %vm62_vm2, %v356_v40, %v370_v10  ;;  %v1541_v9 = vrot.slane %v839_v55, 2  ;;  %v1542_v44 = vrot.slane %v839_v55, 4  ;;  %v1543_v7 = vrot.slane %v839_v55, 6  ;;  %606 = vmatpush.msra.mxu2 %v515_v53 }
  0x40   :  { %v291_v11 = vperm.slane %v1539_v56, 0  ;;  %v292_v17 = vperm.slane %v1540_v60, 0  ;;  %v372_v6 = vsel %vm64_vm3, %v357_v50, %v371_v43  ;;  %v293_v56 = vperm.slane %v90_v32, 0  ;;  %537 = vmatpush.msra.mxu0 %v515_v53 }
  0x41   :  { %v295_v24 = vperm.slane %v1541_v9, 0  ;;  %v296_v13 = vperm.slane %v1542_v44, 0  ;;  %v297_v60 = vperm.slane %v1543_v7, 0  ;;  %v298_v42 = vperm.slane %v847_v59, 0 }
  0x42   :  { %v373_v40 = vsel %vm66_vm4, %v358_v4, %v372_v6  ;;  %v1544_v10 = vrot.slane %v847_v59, 2  ;;  %v1545_v1 = vrot.slane %v847_v59, 4  ;;  %v302_v50 = vsel %vm235_vm7, %v287_v19, %v286_v39 }
  0x43   :  { %v374_v52 = vsel %vm68_vm5, %v359_v0, %v373_v40  ;;  %v303_v32 = vsel %vm58_vm0, %v288_v45, %v302_v50  ;;  %v309_v55 = vsel %vm235_vm7, %v295_v24, %v294_v61  ;;  %v188_v7 = vrot.slane %v1042_v29, 6 }
  0x44   :  { %v299_v9 = vperm.slane %v1544_v10, 0  ;;  %v300_v44 = vperm.slane %v1545_v1, 0  ;;  %382 = vrot.lane.b32.xlu1 %v374_v52, %s691_s0  ;;  %v301_v4 = vperm.slane %v96_v33, 0  ;;  %v304_v53 = vsel %vm60_vm1, %v289_v26, %v303_v32  ;;  %s696_s0 = smov 8  }
  0x45   :  { %v310_v43 = vsel %vm58_vm0, %v296_v13, %v309_v55  ;;  %v459_v39 = vsel %vm235_vm7, %v1069_v14, %v196_v51  ;;  %v305_v1 = vsel %vm62_vm2, %v290_v25, %v304_v53  ;;  %v143_v0 = vperm.slane %v1150_v31, 1 }
  0x46   :  { %v311_v24 = vsel %vm60_vm1, %v297_v60, %v310_v43  ;;  %v460_v45 = vsel %vm58_vm0, %v1075_v15, %v459_v39  ;;  %v306_v59 = vsel %vm64_vm3, %v291_v11, %v305_v1  ;;  %v451_v19 = vperm.slane %v188_v7, 1 }
  0x47   :  { %v312_v33 = vsel %vm62_vm2, %v298_v42, %v311_v24  ;;  %v461_v26 = vsel %vm60_vm1, %v1079_v22, %v460_v45  ;;  %v307_v51 = vsel %vm66_vm4, %v292_v17, %v306_v59  ;;  %v144_v25 = vperm.slane %v131_v47, 1 }
  0x48   :  { %v313_v14 = vsel %vm64_vm3, %v299_v9, %v312_v33  ;;  %v462_v15 = vsel %vm62_vm2, %v200_v62, %v461_v26  ;;  %v308_v11 = vsel %vm68_vm5, %v293_v56, %v307_v51  ;;  %v145_v22 = vperm.slane %v132_v23, 1 }
  0x49   :  { %v314_v61 = vsel %vm66_vm4, %v300_v44, %v313_v14  ;;  %v463_v13 = vsel %vm64_vm3, %v1086_v27, %v462_v15  ;;  %v146_v62 = vperm.slane %v133_v36, 1  ;;  %v147_v47 = vperm.slane %v1162_v5, 1 }
  0x4a   :  { %v315_v17 = vsel %vm68_vm5, %v301_v4, %v314_v61  ;;  %v464_v6 = vsel %vm66_vm4, %v1090_v16, %v463_v13  ;;  %v148_v42 = vperm.slane %v134_v49, 1  ;;  %v150_v27 = vperm.slane %v1105_v54, 1 }
  0x4b   :  { %v646_v60 = vpack.i.bf16 %v308_v11, %v315_v17  ;;  %v465_v56 = vsel %vm68_vm5, %v451_v19, %v464_v6  ;;  %v149_v23 = vperm.slane %v135_v48, 1  ;;  %v1290_v16 = vperm.slane %v137_v58, 1 }
  0x4c   :  { %468 = vrot.lane.b32.xlu0 %v465_v56, %s688_s30  ;;  %v1294_v36 = vperm.slane %v138_v46, 1  ;;  %v1546_v40 = vrot.slane %v1105_v54, 6  ;;  %v154_v49 = vperm.slane %v1117_v2, 1  ;;  %v1547_v9 = vrot.slane %v1117_v2, 2 }
  0x4d   :  { %647 = vrot.lane.b32.xlu2 %v646_v60, %s692_s21  ;;  %v157_v58 = vsel %vm58_vm0, %v144_v25, %v143_v0  ;;  %v422_v48 = vperm.slane %v1026_v30, 0  ;;  %v163_v50 = vsel %vm58_vm0, %v1290_v16, %v150_v27  ;;  %v1548_v52 = vrot.slane %v1026_v30, 2 }
  0x4e   :  { %v1298_v10 = vperm.slane %v1546_v40, 1  ;;  %v1303_v44 = vperm.slane %v1547_v9, 1  ;;  %v158_v46 = vsel %vm60_vm1, %v145_v22, %v157_v58  ;;  %v1549_v55 = vrot.slane %v1026_v30, 4 }
  0x4f   :  { %v423_v32 = vperm.slane %v1548_v52, 0  ;;  %v1550_v53 = vrot.slane %v1117_v2, 4  ;;  %v159_v39 = vsel %vm62_vm2, %v146_v62, %v158_v46  ;;  %v164_v1 = vsel %vm60_vm1, %v1294_v36, %v163_v50 }
  0x50   :  { %v424_v4 = vperm.slane %v1549_v55, 0  ;;  %v1551_v24 = vrot.slane %v1026_v30, 6  ;;  %v160_v59 = vsel %vm64_vm3, %v147_v47, %v159_v39  ;;  %v165_v33 = vsel %vm62_vm2, %v1298_v10, %v164_v1 }
  0x51   :  { %v1320_v43 = vperm.slane %v1550_v53, 1  ;;  %v426_v19 = vperm.slane %v1042_v29, 0  ;;  %v161_v26 = vsel %vm66_vm4, %v148_v42, %v160_v59  ;;  %v166_v51 = vsel %vm64_vm3, %v154_v49, %v165_v33  ;;  %v514_v53 = vld [vmem:[%s1516_s1 + $0x68] sm:$0xff]  ;;  %v509_v59 = vld [vmem:[%s1516_s1 + $0x40] sm:$0xff] }
  0x52   :  { %v425_v45 = vperm.slane %v1551_v24, 0  ;;  %v437_v14 = vsel %vm235_vm7, %v423_v32, %v422_v48  ;;  %v162_v15 = vsel %vm68_vm5, %v149_v23, %v161_v26  ;;  %v167_v30 = vsel %vm66_vm4, %v1303_v44, %v166_v51  ;;  %607 = vmatpush.msra.mxu2 %v514_v53  ;;  %538 = vmatpush.msra.mxu0 %v514_v53  ;;  %v521_v33 = vld [vmem:[%s1516_s1 + $0xa0] sm:$0xff]  ;;  %v520_v26 = vld [vmem:[%s1516_s1 + $0x98] sm:$0xff]  ;;  %v507_v51 = vld [vmem:[%s1516_s1 + $0x30] sm:$0xff] }
  0x53   :  { %v1552_v11 = vrot.slane %v1042_v29, 2  ;;  %v438_v13 = vsel %vm58_vm0, %v424_v4, %v437_v14  ;;  %v168_v17 = vsel %vm68_vm5, %v1320_v43, %v167_v30  ;;  %v171_v6 = vsel %vm78_vm6, 0.0, %v162_v15  ;;  %v519_v14 = vld [vmem:[%s1516_s1 + $0x90] sm:$0xff]  ;;  %v506_v15 = vld [vmem:[%s1516_s1 + $0x28] sm:$0xff] }
  0x54   :  { %v439_v60 = vsel %vm60_vm1, %v425_v45, %v438_v13  ;;  %v172_v56 = vsel %vm78_vm6, 0.0, %v168_v17  ;;  %v1553_v58 = vrot.slane %v1042_v29, 4  ;;  %v429_v50 = vperm.slane %v188_v7, 0  ;;  %v522_v45 = vld [vmem:[%s1516_s1 + $0xa8] sm:$0xff]  ;;  %v505_v17 = vld [vmem:[%s1516_s1 + $0x20] sm:$0xff] }
  0x55   :  { %v427_v61 = vperm.slane %v1552_v11, 0  ;;  %v440_v40 = vsel %vm62_vm2, %v426_v19, %v439_v60  ;;  %v656_v9 = vpack.i.bf16 %v171_v6, %v172_v56  ;;  %v390_v55 = vsel %vm235_vm7, %v144_v25, %v143_v0  ;;  %v513_v25 = vld [vmem:[%s1516_s1 + $0x60] sm:$0xff]  ;;  %v508_v19 = vld [vmem:[%s1516_s1 + $0x38] sm:$0xff]  ;;  %v518_v11 = vld [vmem:[%s1516_s1 + $0x88] sm:$0xff] }
  0x56   :  { %v428_v48 = vperm.slane %v1553_v58, 0  ;;  %v391_v4 = vsel %vm58_vm0, %v145_v22, %v390_v55  ;;  %v1554_v39 = vrot.slane %v1162_v5, 6  ;;  %v525_v5 = vld [vmem:[%s1516_s1 + $0xc0] sm:$0x1]  ;;  %v512_v22 = vld [vmem:[%s1516_s1 + $0x58] sm:$0xff]  ;;  %608 = vmatpush.msra.mxu2 %v513_v25  ;;  %539 = vmatpush.msra.mxu0 %v513_v25  ;;  %v502_v58 = vld [vmem:[%s1516_s1 + $0x8] sm:$0xff] }
  0x57   :  { %v441_v46 = vsel %vm64_vm3, %v427_v61, %v440_v40  ;;  %657 = vrot.lane.b32.xlu2 %v656_v9, %s693_s22  ;;  %v392_v7 = vsel %vm60_vm1, %v146_v62, %v391_v4  ;;  %602 = vmatpush.msk.msra.mxu1 %vm78_vm6, %v525_v5  ;;  %v524_v62 = vld [vmem:[%s1516_s1 + $0xb8] sm:$0xff]  ;;  %v1555_v61 = vperm.slane %v746_v12, 1  ;;  %v517_v6 = vld [vmem:[%s1516_s1 + $0x80] sm:$0xff]  ;;  %v503_v12 = vld [vmem:[%s1516_s1 + $0x10] sm:$0xff]  ;;  %v1556_v40 = vperm.slane %v726_v3, 1 }
  0x58   :  { %v442_v52 = vsel %vm66_vm4, %v428_v48, %v441_v46  ;;  %v388_v29 = vperm.slane %v1554_v39, 1  ;;  %v393_v1 = vsel %vm62_vm2, %v147_v47, %v392_v7  ;;  %v511_v47 = vld [vmem:[%s1516_s1 + $0x50] sm:$0xff]  ;;  %609 = vmatpush.msra.mxu2 %v512_v22  ;;  %540 = vmatpush.msra.mxu0 %v512_v22  ;;  %v504_v60 = vld [vmem:[%s1516_s1 + $0x18] sm:$0xff]  ;;  %v501_v3 = vld [vmem:[%s1516_s1] sm:$0xff]  ;;  %v1558_v55 = vperm.slane %v735_v8, 1 }
  0x59   :  { %v443_v32 = vsel %vm68_vm5, %v429_v50, %v442_v52  ;;  %v394_v24 = vsel %vm64_vm3, %v148_v42, %v393_v1  ;;  %v523_v42 = vld [vmem:[%s1516_s1 + $0xb0] sm:$0xff]  ;;  %567 = vmatpush.msra.mxu1 %v524_v62  ;;  %v70_v13 = vsel %vm58_vm0, %v945_v38, %v1555_v61  ;;  %v59_v9 = vsel %vm58_vm0, %v911_v41, %v1556_v40 }
  0x5a   :  { %v395_v31 = vsel %vm66_vm4, %v149_v23, %v394_v24  ;;  %v510_v23 = vld [vmem:[%s1516_s1 + $0x48] sm:$0xff]  ;;  %610 = vmatpush.msra.mxu2 %v511_v47  ;;  %541 = vmatpush.msra.mxu0 %v511_v47  ;;  %v71_v38 = vsel %vm60_vm1, %v953_v34, %v70_v13  ;;  %v61_v46 = vsel %vm60_vm1, %v915_v63, %v59_v9  ;;  %v1557_v41 = vperm.slane %v768_v18, 1  ;;  %s694_s1 = smov [#allocation2]  }
  0x5b   :  { %v1370_v0 = vsel %vm68_vm5, %v388_v29, %v395_v31  ;;  %568 = vmatpush.msra.mxu1 %v523_v42  ;;  %v72_v48 = vsel %vm62_vm2, %v957_v35, %v71_v38  ;;  %v63_v52 = vsel %vm62_vm2, %v921_v37, %v61_v46  ;;  %vm472_vm8 = vcmask 130048   ;;  %s588_s12 = sshll.u32 %s694_s1, 4  ;;  %s589_s12 = int_to_ptr.vmem [resolvable:$true] %s588_s12 }
  0x5c   :  { %611 = vmatpush.msra.mxu2 %v510_v23  ;;  %542 = vmatpush.msra.mxu0 %v510_v23  ;;  %v73_v50 = vsel %vm64_vm3, %v1557_v41, %v72_v48  ;;  %v65_v4 = vsel %vm64_vm3, %v1558_v55, %v63_v52  ;;  %vm475_vm9 = vcmask 261120   ;;  %vm478_vm10 = vcmask 392192  }
  0x5d   :  { %569 = vmatpush.msra.mxu1 %v522_v45  ;;  %v74_v63 = vsel %vm66_vm4, %v965_v21, %v73_v50  ;;  %v67_v53 = vsel %vm66_vm4, %v931_v20, %v65_v4  ;;  %vm526_vm11 = vcmask 531456   ;;  %vm481_vm12 = vcmask 523264  }
  0x5e   :  { %612 = vmatpush.msra.mxu2 %v509_v59  ;;  %543 = vmatpush.msra.mxu0 %v509_v59  ;;  %v75_v18 = vsel %vm68_vm5, %v970_v28, %v74_v63  ;;  %v69_v21 = vsel %vm68_vm5, %v935_v57, %v67_v53  ;;  %v397_v20 = vsel %vm235_vm7, %v1290_v16, %v150_v27  ;;  %vm484_vm13 = vcmask 654336  }
  0x5f   :  { %446 = vrot.lane.b32.xlu2 %v443_v32, %s689_s7  ;;  %570 = vmatpush.msra.mxu1 %v521_v33  ;;  %v80_v29 = vsel %vm78_vm6, 0.0, %v75_v18  ;;  %v79_v57 = vsel %vm78_vm6, 0.0, %v69_v21  ;;  %v398_v47 = vsel %vm58_vm0, %v1294_v36, %v397_v20  ;;  %vm487_vm14 = vcmask 785408  }
  0x60   :  { %613 = vmatpush.msra.mxu2 %v508_v19  ;;  %544 = vmatpush.msra.mxu0 %v508_v19  ;;  %v399_v23 = vsel %vm60_vm1, %v1298_v10, %v398_v47  ;;  %vm490_vm15 = vcmask 916480  }
  0x61   :  { %571 = vmatpush.msra.mxu1 %v520_v26  ;;  %v400_v36 = vsel %vm62_vm2, %v154_v49, %v399_v23  ;;  %v1559_v49 = vrot.slane %v1117_v2, 6 }
  0x62   :  { %614 = vmatpush.msra.mxu2 %v507_v51  ;;  %545 = vmatpush.msra.mxu0 %v507_v51  ;;  %v401_v61 = vsel %vm64_vm3, %v1303_v44, %v400_v36 }
  0x63   :  { %572 = vmatpush.msra.mxu1 %v519_v14  ;;  %v402_v38 = vsel %vm66_vm4, %v1320_v43, %v401_v61 }
  0x64   :  { %615 = vmatpush.msra.mxu2 %v506_v15  ;;  %546 = vmatpush.msra.mxu0 %v506_v15 }
  0x65   :  { %573 = vmatpush.msra.mxu1 %v518_v11 }
  0x66   :  { %616 = vmatpush.msra.mxu2 %v505_v17  ;;  %547 = vmatpush.msra.mxu0 %v505_v17 }
  0x67   :  { %574 = vmatpush.msra.mxu1 %v517_v6 }
  0x68   :  { %617 = vmatpush.msra.mxu2 %v504_v60  ;;  %548 = vmatpush.msra.mxu0 %v504_v60  ;;  %v389_v60 = vperm.slane %v1559_v49, 1 }
  0x6a   :  { %618 = vmatpush.msra.mxu2 %v503_v12  ;;  %549 = vmatpush.msra.mxu0 %v503_v12  ;;  %v403_v44 = vsel %vm68_vm5, %v389_v60, %v402_v38 }
  0x6c   :  { %619 = vmatpush.msra.mxu2 %v502_v58  ;;  %550 = vmatpush.msra.mxu0 %v502_v58 }
  0x6e   :  { %620 = vmatpush.msra.mxu2 %v501_v3  ;;  %551 = vmatpush.msra.mxu0 %v501_v3 }
  0x7f   :  { %v409_v30 = vpop.permute.xlu1 %408 }
  0x80   :  { %v493_v37 = vsel %vm472_vm8, %v1370_v0, %v409_v30 }
  0x8a   :  { %v633_v56 = vpop.permute.xlu0 %632 }
  0x8b   :  { %v634_v7 = vunpack.i.l.bf16 %v633_v56  ;;  %v635_v25 = vunpack.i.h.bf16 %v633_v56 }
  0x8d   :  { %v474_v5 = vsel %vm472_vm8, %v80_v29, %v634_v7  ;;  %v473_v42 = vsel %vm472_vm8, %v79_v57, %v635_v25 }
  0x92   :  { %v445_v35 = vpop.permute.xlu2 %444 }
  0x93   :  { %v495_v8 = vsel %vm475_vm9, %v493_v37, %v445_v35 }
  0x94   :  { %v643_v34 = vpop.permute.xlu1 %642 }
  0x95   :  { %v644_v22 = vunpack.i.l.bf16 %v643_v34  ;;  %v645_v27 = vunpack.i.h.bf16 %v643_v34 }
  0x9b   :  { %v638_v32 = vpop.permute.xlu0 %637 }
  0x9c   :  { %v639_v28 = vunpack.i.l.bf16 %v638_v32  ;;  %v640_v62 = vunpack.i.h.bf16 %v638_v32 }
  0x9e   :  { %v477_v54 = vsel %vm475_vm9, %v474_v5, %v639_v28  ;;  %v476_v45 = vsel %vm475_vm9, %v473_v42, %v640_v62 }
  0x9f   :  { %v653_v39 = vpop.permute.xlu1 %652  ;;  %v480_v19 = vsel %vm478_vm10, %v477_v54, %v644_v22  ;;  %v479_v15 = vsel %vm478_vm10, %v476_v45, %v645_v27 }
  0xa0   :  { %v654_v59 = vunpack.i.l.bf16 %v653_v39  ;;  %v655_v51 = vunpack.i.h.bf16 %v653_v39 }
  0xa3   :  { %v467_v1 = vpop.permute.xlu0 %466 }
  0xa4   :  { %v497_v24 = vsel %vm478_vm10, %v495_v8, %v467_v1 }
  0xa5   :  { %v499_v0 = vsel %vm481_vm12, %v497_v24, 1.0 }
  0xa6   :  { %603 = vmatmul.msk.f32.vlgmr.msra.gmra.mxu1 %vm526_vm11, %v499_v0 }
  0xa7   :  { %v648_v31 = vpop.permute.xlu2 %647  ;;  %v411_v33 = vpop.permute.xlu1 %410 }
  0xa8   :  { %v649_v16 = vunpack.i.l.bf16 %v648_v31  ;;  %v650_v26 = vunpack.i.h.bf16 %v648_v31  ;;  %v494_v46 = vsel %vm472_vm8, %v403_v44, %v411_v33 }
  0xaa   :  { %v483_v14 = vsel %vm481_vm12, %v480_v19, %v649_v16  ;;  %v482_v6 = vsel %vm481_vm12, %v479_v15, %v650_v26 }
  0xab   :  { %v486_v10 = vsel %vm484_vm13, %v483_v14, %v654_v59  ;;  %v485_v12 = vsel %vm484_vm13, %v482_v6, %v655_v51 }
  0xaf   :  { %v385_v13 = vpop.permute.xlu0 %384 }
  0xb1   :  { %v658_v30 = vpop.permute.xlu2 %657 }
  0xb2   :  { %v659_v11 = vunpack.i.l.bf16 %v658_v30  ;;  %v660_v17 = vunpack.i.h.bf16 %v658_v30 }
  0xb4   :  { %v489_v56 = vsel %vm487_vm14, %v486_v10, %v659_v11  ;;  %v488_v58 = vsel %vm487_vm14, %v485_v12, %v660_v17 }
  0xb5   :  { %v492_v40 = vsel %vm490_vm15, %v489_v56, %v385_v13 }
  0xb6   :  { %555 = vmatmul.f32.vlgmr.msra.gmra.mxu2 %v492_v40  ;;  %v383_v9 = vpop.permute.xlu1 %382 }
  0xb7   :  { %v491_v48 = vsel %vm490_vm15, %v488_v58, %v383_v9 }
  0xb8   :  { %552 = vmatmul.f32.vlgmr.msra.gmra.mxu0 %v491_v48 }
  0xb9   :  { %v447_v3 = vpop.permute.xlu2 %446 }
  0xba   :  { %v496_v2 = vsel %vm475_vm9, %v494_v46, %v447_v3 }
  0xbe   :  { %v469_v34 = vpop.permute.xlu0 %468 }
  0xbf   :  { %v498_v41 = vsel %vm478_vm10, %v496_v2, %v469_v34 }
  0xc0   :  { %v500_v50 = vsel %vm481_vm12, %v498_v41, 1.0 }
  0xc1   :  { %604 = vmatmul.msk.f32.gmra.mxu1 %vm526_vm11, %v500_v50 }
 0x123   :  { %v576_v43 = vpop.f32.mrf.mxu1 }
 0x135   :  { %v553_v52 = vpop.f32.mrf.mxu0 }
 0x136   :  { %v577_v35 = vadd.f32 %v576_v43, %v553_v52 }
 0x138   :  { %582 = vst.msk [vmem:[#allocation2] sm:$0xff] %vm472_vm8, %v577_v35 }
 0x139   :  { %v556_v32 = vpop.f32.mrf.mxu2 }
 0x13e   :  { %v579_v63 = vpop.f32.mrf.mxu1 }
 0x13f   :  { %v580_v55 = vadd.f32 %v579_v63, %v556_v32 }
 0x141   :  { %583 = vst.msk [vmem:[#allocation2 + $0x8] sm:$0xff] %vm472_vm8, %v580_v55 }
 0x142   :  { %596 = dma.vmem_to_hbm [thread:$0]  %s589_s12, 256, %s591_s15, [#allocation3], %s695_s16, %s695_s16, %s696_s0  }
 0x143   :  { %685 = dma.done.wait [#allocation3], 256  }
 0x144   :  { %686 = vsyncadd [#allocation3], 4294967040 }
 0x145   :  { %601 = vsyncpa [#allocation3], 1 }

</bundles_post_ra>
